<compile_context>
chip_gen: v7x
topology: tpu7x:2x2x1
jax: 0.10.0
libtpu: 0.0.40
codegen_flags: <defaults>
</compile_context>

<pallas_src>
import functools

import jax
import jax.numpy as jnp
from jax.experimental import pallas as pl
from jax.experimental.pallas import tpu as pltpu

_MIB = 1024 * 1024


def _vmem_capacity_bytes():
    try:
        return int(pltpu.get_tpu_info().vmem_capacity_bytes)
    except Exception:
        # Conservative fallback (v7x per-TensorCore size); valid everywhere.
        return 64 * _MIB


# --------------------- 2D lane-dense kernels (D % 128 == 0) ---------------------

def _prompt_kernel_2d_shared(prefix_ref, ctx_ref, suffix_ref, out_ref, *, dim, n_ctx):
    # prefix_ref : (TC, D)           -> out lanes [0, D)
    # ctx_ref    : (1, n_ctx*D)      -> out lanes [D, (1+n_ctx)*D)  (bcast over classes)
    # suffix_ref : (TC, suf_len*D)   -> out lanes [(1+n_ctx)*D, seq*D)
    tc = out_ref.shape[0]
    c0 = dim
    c1 = (1 + n_ctx) * dim
    out_ref[:, 0:c0] = prefix_ref[...]
    out_ref[:, c0:c1] = jnp.broadcast_to(ctx_ref[...], (tc, n_ctx * dim))
    out_ref[:, c1:] = suffix_ref[...]


def _prompt_kernel_2d_csc(prefix_ref, ctx_ref, suffix_ref, out_ref, *, dim, n_ctx):
    c0 = dim
    c1 = (1 + n_ctx) * dim
    out_ref[:, 0:c0] = prefix_ref[...]
    out_ref[:, c0:c1] = ctx_ref[...]
    out_ref[:, c1:] = suffix_ref[...]


# --------------------- 3D fallback kernels (D % 128 != 0) -----------------------

def _prompt_kernel_3d_shared(prefix_ref, ctx_ref, suffix_ref, out_ref, *, n_ctx):
    tc = out_ref.shape[0]
    out_ref[:, 0:1, :] = prefix_ref[...]
    out_ref[:, 1:1 + n_ctx, :] = jnp.broadcast_to(
        ctx_ref[...], (tc,) + ctx_ref.shape[1:])
    out_ref[:, 1 + n_ctx:, :] = suffix_ref[...]


def _prompt_kernel_3d_csc(prefix_ref, ctx_ref, suffix_ref, out_ref, *, n_ctx):
    out_ref[:, 0:1, :] = prefix_ref[...]
    out_ref[:, 1:1 + n_ctx, :] = ctx_ref[...]
    out_ref[:, 1 + n_ctx:, :] = suffix_ref[...]


# --------------------------------- wrapper --------------------------------------

def prompt_learner_forward(ctx, token_prefix, token_suffix, *, class_tile=None):
    """prompts = cat([prefix, ctx(.expand(n_cls,-1,-1)), suffix], dim=1)."""
    n_cls, one, dim = token_prefix.shape
    assert one == 1
    assert token_suffix.shape[0] == n_cls and token_suffix.shape[2] == dim
    suf_len = token_suffix.shape[1]

    out_dtype = token_prefix.dtype
    class_specific = (ctx.ndim == 3)
    if class_specific:
        assert ctx.shape[0] == n_cls and ctx.shape[2] == dim
        n_ctx = ctx.shape[1]
    else:
        assert ctx.ndim == 2 and ctx.shape[1] == dim
        n_ctx = ctx.shape[0]
    seq = 1 + n_ctx + suf_len

    # Hoist dtype unification out of the kernel.
    ctx = ctx.astype(out_dtype)
    token_prefix = token_prefix.astype(out_dtype)
    token_suffix = token_suffix.astype(out_dtype)
    itemsize = jnp.dtype(out_dtype).itemsize

    # Generation-aware VMEM budgeting.
    vmem_cap = _vmem_capacity_bytes()
    budget = min(vmem_cap // 2, 64 * _MIB)          # ~32 MiB on v7x, 64 MiB on v5e/v6e
    vmem_limit = min((vmem_cap * 3) // 4, 96 * _MIB)

    # Bytes streamed per class per grid step; each BlockSpec is double-buffered.
    per_class = (1 + suf_len + seq + (n_ctx if class_specific else 0)) * dim * itemsize
    resident = 0 if class_specific else 2 * n_ctx * dim * itemsize  # shared ctx stays in VMEM

    if class_tile is None:
        tc = max(1, (budget - resident) // (2 * per_class))
    else:
        tc = int(class_tile)
    tc = max(1, min(tc, n_cls))

    # v7x megacore: keep the 'parallel' grid axis at >= 2 steps for big class counts.
    if n_cls >= 16:
        half = -(-n_cls // 2)
        half = ((half + 7) // 8) * 8
        tc = min(tc, half)

    # (8, 128) layout: partial class tiles must keep the sublane dim a multiple of 8.
    if tc < n_cls:
        tc = max(8, (tc // 8) * 8)
        tc = min(tc, n_cls)

    num_tiles = pl.cdiv(n_cls, tc)

    cost = pl.CostEstimate(
        flops=0, transcendentals=0,
        bytes_accessed=(n_cls * (1 + suf_len + seq) * dim
                        + (n_cls if class_specific else 1) * n_ctx * dim) * itemsize)
    params = pltpu.CompilerParams(
        dimension_semantics=("parallel",),   # classes are independent
        vmem_limit_bytes=vmem_limit)

    if dim % 128 == 0:
        # Lane-dense 2D path: concat offsets are multiples of 128 on the lane axis.
        prefix2d = token_prefix.reshape(n_cls, dim)
        suffix2d = token_suffix.reshape(n_cls, suf_len * dim)
        if class_specific:
            ctx_in = ctx.reshape(n_cls, n_ctx * dim)
            ctx_spec = pl.BlockSpec((tc, n_ctx * dim), lambda i: (i, 0))
            kernel = functools.partial(_prompt_kernel_2d_csc, dim=dim, n_ctx=n_ctx)
        else:
            ctx_in = ctx.reshape(1, n_ctx * dim)
            ctx_spec = pl.BlockSpec((1, n_ctx * dim), lambda i: (0, 0))  # resident
            kernel = functools.partial(_prompt_kernel_2d_shared, dim=dim, n_ctx=n_ctx)

        out2d = pl.pallas_call(
            kernel,
            out_shape=jax.ShapeDtypeStruct((n_cls, seq * dim), out_dtype),
            grid=(num_tiles,),
            in_specs=[
                pl.BlockSpec((tc, dim), lambda i: (i, 0)),               # prefix
                ctx_spec,                                                 # ctx
                pl.BlockSpec((tc, suf_len * dim), lambda i: (i, 0)),      # suffix
            ],
            out_specs=pl.BlockSpec((tc, seq * dim), lambda i: (i, 0)),
            compiler_params=params,
            cost_estimate=cost,
        )(prefix2d, ctx_in, suffix2d)
        return out2d.reshape(n_cls, seq, dim)

    # Fallback 3D path (sublane-offset stores) when D is not a multiple of 128.
    if class_specific:
        ctx_in = ctx
        ctx_spec = pl.BlockSpec((tc, n_ctx, dim), lambda i: (i, 0, 0))
        kernel = functools.partial(_prompt_kernel_3d_csc, n_ctx=n_ctx)
    else:
        ctx_in = ctx[None]                                  # (1, n_ctx, D), resident
        ctx_spec = pl.BlockSpec((1, n_ctx, dim), lambda i: (0, 0, 0))
        kernel = functools.partial(_prompt_kernel_3d_shared, n_ctx=n_ctx)

    return pl.pallas_call(
        kernel,
        out_shape=jax.ShapeDtypeStruct((n_cls, seq, dim), out_dtype),
        grid=(num_tiles,),
        in_specs=[
            pl.BlockSpec((tc, 1, dim), lambda i: (i, 0, 0)),
            ctx_spec,
            pl.BlockSpec((tc, suf_len, dim), lambda i: (i, 0, 0)),
        ],
        out_specs=pl.BlockSpec((tc, seq, dim), lambda i: (i, 0, 0)),
        compiler_params=params,
        cost_estimate=cost,
    )(token_prefix, ctx_in, token_suffix)


if __name__ == "__main__":
    # Small, CLIP-like synthetic configuration.
    n_cls = 12       # cfg.initial_increment
    n_ctx = 4        # cfg.N_CTX  ("X X X X" generic context)
    ctx_dim = 128    # clip_model.ln_final.weight.shape[0] (CLIP: 512)
    seq_len = 16     # tokenized prompt length (CLIP uses 77; shrunk here)
    suf_len = seq_len - 1 - n_ctx

    key = jax.random.PRNGKey(0)
    k_ctx, k_pre, k_suf, k_csc = jax.random.split(key, 4)

    # nn.init.normal_(ctx_vectors, std=0.02) — generic (shared) context.
    ctx = 0.02 * jax.random.normal(k_ctx, (n_ctx, ctx_dim), dtype=jnp.float32)
    # token_prefix / token_suffix come from clip_model.token_embedding in the
    # original module; here they are deterministic synthetic embeddings.
    token_prefix = jax.random.normal(k_pre, (n_cls, 1, ctx_dim), dtype=jnp.float32)
    token_suffix = jax.random.normal(k_suf, (n_cls, suf_len, ctx_dim), dtype=jnp.float32)

    # Pure-JAX reference of the 'end' concat semantics.
    ctx_exp = jnp.broadcast_to(ctx[None, :, :], (n_cls, n_ctx, ctx_dim))
    ref = jnp.concatenate([token_prefix, ctx_exp, token_suffix], axis=1)

    # 1) Default tiling (everything fits in one class tile -> single grid step).
    prompts = jax.block_until_ready(
        prompt_learner_forward(ctx, token_prefix, token_suffix))
    assert prompts.shape == (n_cls, seq_len, ctx_dim)
    assert jnp.allclose(prompts, ref), "Pallas output mismatch vs reference"

    # 2) Multi-step grid with a partial tail block (12 classes, tile of 8): exercises
    #    the no-pad edge-block path (OOB rows discarded by Pallas).
    prompts_tail = jax.block_until_ready(
        prompt_learner_forward(ctx, token_prefix, token_suffix, class_tile=8))
    assert jnp.allclose(prompts_tail, ref), "Partial-tail path mismatch"

    # 3) Class-specific context (CSC) path: ctx has shape (n_cls, n_ctx, dim).
    ctx_csc = 0.02 * jax.random.normal(k_csc, (n_cls, n_ctx, ctx_dim),
                                       dtype=jnp.float32)
    ref_csc = jnp.concatenate([token_prefix, ctx_csc, token_suffix], axis=1)
    prompts_csc = jax.block_until_ready(
        prompt_learner_forward(ctx_csc, token_prefix, token_suffix, class_tile=8))
    assert jnp.allclose(prompts_csc, ref_csc), "CSC path mismatch"

    print("KERNEL_OK")
</pallas_src>

<mosaic_0001>
module attributes {stable_mosaic.version = 11 : i64} {
  func.func @_prompt_kernel_2d_shared(%arg0: i32, %arg1: memref<12x128xf32, #tpu.memory_space<vmem>>, %arg2: memref<1x512xf32, #tpu.memory_space<vmem>>, %arg3: memref<12x1408xf32, #tpu.memory_space<vmem>>, %arg4: memref<12x2048xf32, #tpu.memory_space<vmem>>) attributes {dimension_semantics = [#tpu.dimension_semantics<parallel>], iteration_bounds = array<i64: 1>, scalar_prefetch = 0 : i64, scratch_operands = 0 : i64, tpu.core_type = #tpu.core_type<tc>, window_params = [{transform_indices = @transform_0, window_bounds = array<i64: 12, 128>}, {pipeline_mode = #tpu.pipeline_mode<synchronous>, transform_indices = @transform_1, window_bounds = array<i64: 1, 512>}, {transform_indices = @transform_2, window_bounds = array<i64: 12, 1408>}, {transform_indices = @transform_3, window_bounds = array<i64: 12, 2048>}]} {
    %c0 = arith.constant 0 : index
    %c0_0 = arith.constant 0 : index
    %0 = vector.load %arg1[%c0, %c0_0] : memref<12x128xf32, #tpu.memory_space<vmem>>, vector<12x128xf32>
    %c0_1 = arith.constant 0 : index
    %c0_2 = arith.constant 0 : index
    %1 = vector.load %arg4[%c0_1, %c0_2] : memref<12x2048xf32, #tpu.memory_space<vmem>>, vector<12x128xf32>
    tpu.vector_store %arg4[%c0_1, %c0_2], %0 {strides = array<i32>} : memref<12x2048xf32, #tpu.memory_space<vmem>>, vector<12x128xf32>,
    %c0_3 = arith.constant 0 : index
    %c0_4 = arith.constant 0 : index
    %2 = vector.load %arg2[%c0_3, %c0_4] : memref<1x512xf32, #tpu.memory_space<vmem>>, vector<1x512xf32>
    %3 = vector.shape_cast %2 : vector<1x512xf32> to vector<1x512xf32>
    %4 = vector.broadcast %3 : vector<1x512xf32> to vector<12x512xf32>
    %c0_5 = arith.constant 0 : index
    %c128 = arith.constant 128 : index
    %5 = vector.load %arg4[%c0_5, %c128] : memref<12x2048xf32, #tpu.memory_space<vmem>>, vector<12x512xf32>
    tpu.vector_store %arg4[%c0_5, %c128], %4 {strides = array<i32>} : memref<12x2048xf32, #tpu.memory_space<vmem>>, vector<12x512xf32>,
    %c0_6 = arith.constant 0 : index
    %c0_7 = arith.constant 0 : index
    %6 = vector.load %arg3[%c0_6, %c0_7] : memref<12x1408xf32, #tpu.memory_space<vmem>>, vector<12x1408xf32>
    %c0_8 = arith.constant 0 : index
    %c640 = arith.constant 640 : index
    %7 = vector.load %arg4[%c0_8, %c640] : memref<12x2048xf32, #tpu.memory_space<vmem>>, vector<12x1408xf32>
    tpu.vector_store %arg4[%c0_8, %c640], %6 {strides = array<i32>} : memref<12x2048xf32, #tpu.memory_space<vmem>>, vector<12x1408xf32>,
    return
  }
  func.func @transform_0(%arg0: i32) -> (i32, i32) {
    %c0_i32 = arith.constant 0 : i32
    %c0_i32_0 = arith.constant 0 : i32
    return %arg0, %c0_i32 : i32, i32
  }
  func.func @transform_1(%arg0: i32) -> (i32, i32) {
    %c0_i32 = arith.constant 0 : i32
    %c0_i32_0 = arith.constant 0 : i32
    %c0_i32_1 = arith.constant 0 : i32
    return %c0_i32, %c0_i32_0 : i32, i32
  }
  func.func @transform_2(%arg0: i32) -> (i32, i32) {
    %c0_i32 = arith.constant 0 : i32
    %c0_i32_0 = arith.constant 0 : i32
    return %arg0, %c0_i32 : i32, i32
  }
  func.func @transform_3(%arg0: i32) -> (i32, i32) {
    %c0_i32 = arith.constant 0 : i32
    %c0_i32_0 = arith.constant 0 : i32
    return %arg0, %c0_i32 : i32, i32
  }
}

</mosaic_0001>

<bundles_post_ra>
// kernel: tpu_custom_call.1
= control target key start
LH: loop header
LB: loop body
LE: loop exit
PB: predicated region body
PF: predicated region fallthrough
CT: control target
= control target key end

     0   :  { %8 = vsyncpa [#allocation3], 0  ;;  %s340_s0 = inlined_call_operand.hbm [shape: f32[12,128], index: 0, kind: input, shape index: {}]   ;;  %s341_s1 = inlined_call_operand.hbm [shape: f32[1,512], index: 1, kind: input, shape index: {}]   ;;  %s342_s2 = inlined_call_operand.hbm [shape: f32[12,1408], index: 2, kind: input, shape index: {}]   ;;  %s343_s3 = inlined_call_operand.hbm [shape: f32[12,2048], index: 3, kind: output, shape index: {}]  }
   0x1   :  { %9 = vsyncpa [#allocation6], 0 }
   0x2   :  { %10 = vsyncpa [#allocation4], 0  ;;  %s253_s12 = smov [#allocation5]   ;;  %s254_s14 = smov [#allocation2]  }
   0x3   :  { %s29_s13 = sshll.u32 %s253_s12, 4  ;;  %s16_s15 = sshll.u32 %s254_s14, 4  ;;  %s30_s13 = int_to_ptr.vmem [resolvable:$true] %s29_s13  ;;  %s282_s15 = int_to_ptr.vmem [resolvable:$true] %s16_s15 }
   0x4   :  { %s159_s18 = scalar_lea.hbm %s341_s1, 64 }
   0x5   :  { %p160_p0 = scmp.ne.s32.totalorder %s341_s1, %s159_s18  ;;  %p163_p1 = scmp.lt.u32.totalorder %s159_s18, %s341_s1 }
   0x7   :  { %p165_p2 = pnand %p163_p1, %p160_p0 }
   0x9   :  { %168 = shalt.err (!%p165_p2)
}
   0xa   :  { %s169_s23 = scalar_lea.vmem %s30_s13, 64  ;;  %p174_p4 = scmp.lt.s32.totalorder %s30_s13, %s30_s13 }
   0xb   :  { %p170_p3 = scmp.ne.s32.totalorder %s30_s13, %s169_s23  ;;  %p175_p5 = scmp.lt.s32.totalorder %s169_s23, %s169_s23 }
   0xd   :  { %p176_p6 = por %p175_p5, %p174_p4 }
   0xf   :  { %p177_p7 = pnand %p176_p6, %p170_p3 }
  0x11   :  { %180 = shalt.err (!%p177_p7)
}
  0x12   :  { %32 = dma.hbm_to_vmem [thread:$0]  %s341_s1, 64, %s30_s13, [#allocation6]  }
  0x13   :  { %s181_s28 = scalar_lea.hbm %s340_s0, 256 }
  0x14   :  { %p182_p8 = scmp.ne.s32.totalorder %s340_s0, %s181_s28  ;;  %p185_p9 = scmp.lt.u32.totalorder %s181_s28, %s340_s0 }
  0x16   :  { %p187_p10 = pnand %p185_p9, %p182_p8 }
  0x18   :  { %190 = shalt.err (!%p187_p10)
}
  0x19   :  { %s191_s6 = scalar_lea.vmem %s282_s15, 256  ;;  %p196_p12 = scmp.lt.s32.totalorder %s282_s15, %s282_s15 }
  0x1a   :  { %p192_p11 = scmp.ne.s32.totalorder %s282_s15, %s191_s6  ;;  %p197_p13 = scmp.lt.s32.totalorder %s191_s6, %s191_s6 }
  0x1c   :  { %p198_p0 = por %p197_p13, %p196_p12 }
  0x1e   :  { %p199_p1 = pnand %p198_p0, %p192_p11 }
  0x20   :  { %202 = shalt.err (!%p199_p1)
}
  0x21   :  { %s255_s1 = smov 128   ;;  %s256_s7 = smov 8  }
  0x22   :  { %22 = dma.hbm_to_vmem [thread:$0]  %s340_s0, 256, %s282_s15, [#allocation3], %s255_s1, %s255_s1, %s256_s7  }
  0x23   :  { %s257_s10 = smov [#allocation7]   ;;  %s203_s14 = scalar_lea.hbm %s342_s2, 2816 }
  0x24   :  { %s38_s11 = sshll.u32 %s257_s10, 4  ;;  %p204_p2 = scmp.ne.s32.totalorder %s342_s2, %s203_s14  ;;  %s39_s11 = int_to_ptr.vmem [resolvable:$true] %s38_s11 }
  0x25   :  { %p207_p3 = scmp.lt.u32.totalorder %s203_s14, %s342_s2 }
  0x27   :  { %p209_p4 = pnand %p207_p3, %p204_p2 }
  0x29   :  { %212 = shalt.err (!%p209_p4)
}
  0x2a   :  { %s213_s20 = scalar_lea.vmem %s39_s11, 2816  ;;  %p218_p6 = scmp.lt.s32.totalorder %s39_s11, %s39_s11 }
  0x2b   :  { %p214_p5 = scmp.ne.s32.totalorder %s39_s11, %s213_s20  ;;  %p219_p7 = scmp.lt.s32.totalorder %s213_s20, %s213_s20 }
  0x2d   :  { %p220_p8 = por %p219_p7, %p218_p6 }
  0x2f   :  { %p221_p9 = pnand %p220_p8, %p214_p5 }
  0x31   :  { %224 = shalt.err (!%p221_p9)
}
  0x32   :  { %s258_s0 = smov 1408   ;;  %s259_s15 = smov 88  }
  0x33   :  { %44 = dma.hbm_to_vmem [thread:$0]  %s342_s2, 2816, %s39_s11, [#allocation6], %s258_s0, %s258_s0, %s259_s15  }
  0x34   :  { %247 = dma.done.wait [#allocation3], 256  }
  0x35   :  { %248 = vsyncadd [#allocation3], 4294967040 }
  0x36   :  { %249 = dma.done.wait [#allocation6], 2880  }
  0x37   :  { %250 = vsyncadd [#allocation6], 4294964416  ;;  %v60_v0 = vlaneseq  ;;  %v54_v6 = vld [vmem:[#allocation2] sm:$0xff]  ;;  %v55_v7 = vld [vmem:[#allocation2 + $0x8] sm:$0xf]  ;;  %s260_s2 = smov [#allocation8]  }
  0x38   :  { %v58_v8 = vld [vmem:[#allocation5] sm:$0xf]  ;;  %56 = vst [vmem:[#allocation8] sm:$0xff] %v54_v6  ;;  %57 = vst [vmem:[#allocation8 + $0x80] sm:$0xf] %v55_v7  ;;  %v88_v13 = vld [vmem:[#allocation7] sm:$0xff] }
  0x39   :  { %v61_v1 = vshrl.u32 %v60_v0, 7  ;;  %v89_v14 = vld [vmem:[#allocation7 + $0x8] sm:$0xff]  ;;  %v90_v15 = vld [vmem:[#allocation7 + $0x10] sm:$0xff]  ;;  %110 = vst [vmem:[#allocation8 + $0x28] sm:$0xff] %v88_v13  ;;  %v91_v16 = vld [vmem:[#allocation7 + $0x18] sm:$0xff]  ;;  %s137_s23 = sshll.u32 %s260_s2, 4  ;;  %s138_s23 = int_to_ptr.vmem [resolvable:$true] %s137_s23 }
  0x3a   :  { %111 = vst [vmem:[#allocation8 + $0x30] sm:$0xff] %v89_v14  ;;  %112 = vst [vmem:[#allocation8 + $0x38] sm:$0xff] %v90_v15  ;;  %v92_v17 = vld [vmem:[#allocation7 + $0x20] sm:$0xff]  ;;  %v93_v18 = vld [vmem:[#allocation7 + $0x28] sm:$0xff]  ;;  %s225_s24 = scalar_lea.vmem %s138_s23, 4096  ;;  %p230_p11 = scmp.lt.s32.totalorder %s138_s23, %s138_s23 }
  0x3b   :  { %v62_v2 = vsub.s32 0, %v61_v1  ;;  %v66_v3 = vsub.s32 1, %v61_v1  ;;  %v70_v4 = vsub.s32 2, %v61_v1  ;;  %v74_v5 = vsub.s32 3, %v61_v1  ;;  %113 = vst [vmem:[#allocation8 + $0x40] sm:$0xff] %v91_v16  ;;  %114 = vst [vmem:[#allocation8 + $0x48] sm:$0xff] %v92_v17  ;;  %p226_p10 = scmp.ne.s32.totalorder %s138_s23, %s225_s24  ;;  %p231_p12 = scmp.lt.s32.totalorder %s225_s24, %s225_s24 }
  0x3c   :  { %115 = vst [vmem:[#allocation8 + $0x50] sm:$0xff] %v93_v18  ;;  %v94_v19 = vld [vmem:[#allocation7 + $0x30] sm:$0xff]  ;;  %v95_v20 = vld [vmem:[#allocation7 + $0x38] sm:$0xff]  ;;  %v96_v21 = vld [vmem:[#allocation7 + $0x40] sm:$0xff] }
  0x3d   :  { %v63_v9 = vrot.slane %v58_v8, %v62_v2  ;;  %v67_v10 = vrot.slane %v58_v8, %v66_v3  ;;  %v71_v11 = vrot.slane %v58_v8, %v70_v4  ;;  %v75_v12 = vrot.slane %v58_v8, %v74_v5  ;;  %116 = vst [vmem:[#allocation8 + $0x58] sm:$0xff] %v94_v19  ;;  %v97_v22 = vld [vmem:[#allocation7 + $0x48] sm:$0xff]  ;;  %v98_v23 = vld [vmem:[#allocation7 + $0x50] sm:$0xff]  ;;  %v99_v24 = vld [vmem:[#allocation7 + $0x58] sm:$0xf]  ;;  %p232_p13 = por %p231_p12, %p230_p11 }
  0x3e   :  { %117 = vst [vmem:[#allocation8 + $0x60] sm:$0xff] %v95_v20  ;;  %118 = vst [vmem:[#allocation8 + $0x68] sm:$0xff] %v96_v21  ;;  %v100_v25 = vld [vmem:[#allocation7 + $0x60] sm:$0xf]  ;;  %v101_v26 = vld [vmem:[#allocation7 + $0x68] sm:$0xf] }
  0x3f   :  { %80 = vst [vmem:[#allocation8 + $0x8] sm:$0xff] %v63_v9  ;;  %84 = vst [vmem:[#allocation8 + $0x88] sm:$0xf] %v63_v9  ;;  %v102_v27 = vld [vmem:[#allocation7 + $0x70] sm:$0xf]  ;;  %p233_p0 = pnand %p232_p13, %p226_p10 }
  0x40   :  { %81 = vst [vmem:[#allocation8 + $0x10] sm:$0xff] %v67_v10  ;;  %85 = vst [vmem:[#allocation8 + $0x90] sm:$0xf] %v67_v10  ;;  %v103_v28 = vld [vmem:[#allocation7 + $0x78] sm:$0xf] }
  0x41   :  { %82 = vst [vmem:[#allocation8 + $0x18] sm:$0xff] %v71_v11  ;;  %86 = vst [vmem:[#allocation8 + $0x98] sm:$0xf] %v71_v11  ;;  %v104_v29 = vld [vmem:[#allocation7 + $0x80] sm:$0xf] }
  0x42   :  { %83 = vst [vmem:[#allocation8 + $0x20] sm:$0xff] %v75_v12  ;;  %87 = vst [vmem:[#allocation8 + $0xa0] sm:$0xf] %v75_v12  ;;  %v105_v30 = vld [vmem:[#allocation7 + $0x88] sm:$0xf] }
  0x43   :  { %119 = vst [vmem:[#allocation8 + $0x70] sm:$0xff] %v97_v22  ;;  %120 = vst [vmem:[#allocation8 + $0x78] sm:$0xff] %v98_v23  ;;  %v106_v31 = vld [vmem:[#allocation7 + $0x90] sm:$0xf]  ;;  %v107_v32 = vld [vmem:[#allocation7 + $0x98] sm:$0xf] }
  0x44   :  { %121 = vst [vmem:[#allocation8 + $0xa8] sm:$0xf] %v99_v24  ;;  %122 = vst [vmem:[#allocation8 + $0xb0] sm:$0xf] %v100_v25  ;;  %v108_v33 = vld [vmem:[#allocation7 + $0xa0] sm:$0xf] }
  0x45   :  { %123 = vst [vmem:[#allocation8 + $0xb8] sm:$0xf] %v101_v26  ;;  %124 = vst [vmem:[#allocation8 + $0xc0] sm:$0xf] %v102_v27  ;;  %v109_v34 = vld [vmem:[#allocation7 + $0xa8] sm:$0xf] }
  0x46   :  { %125 = vst [vmem:[#allocation8 + $0xc8] sm:$0xf] %v103_v28  ;;  %126 = vst [vmem:[#allocation8 + $0xd0] sm:$0xf] %v104_v29 }
  0x47   :  { %127 = vst [vmem:[#allocation8 + $0xd8] sm:$0xf] %v105_v30  ;;  %128 = vst [vmem:[#allocation8 + $0xe0] sm:$0xf] %v106_v31 }
  0x48   :  { %129 = vst [vmem:[#allocation8 + $0xe8] sm:$0xf] %v107_v32  ;;  %130 = vst [vmem:[#allocation8 + $0xf0] sm:$0xf] %v108_v33 }
  0x49   :  { %131 = vst [vmem:[#allocation8 + $0xf8] sm:$0xf] %v109_v34 }
  0x4a   :  { %236 = shalt.err (!%p233_p0)
}
  0x4b   :  { %s237_s27 = scalar_lea.hbm %s343_s3, 4096 }
  0x4c   :  { %p238_p1 = scmp.ne.s32.totalorder %s343_s3, %s237_s27  ;;  %p241_p2 = scmp.lt.u32.totalorder %s237_s27, %s343_s3 }
  0x4e   :  { %p243_p3 = pnand %p241_p2, %p238_p1 }
  0x50   :  { %246 = shalt.err (!%p243_p3)
}
  0x51   :  { %s261_s5 = smov 2048  }
  0x52   :  { %143 = dma.vmem_to_hbm [thread:$0]  %s138_s23, 4096, %s343_s3, [#allocation4], %s261_s5, %s261_s5, %s255_s1  }
  0x53   :  { %251 = dma.done.wait [#allocation4], 4096  }
  0x54   :  { %252 = vsyncadd [#allocation4], 4294963200 }
  0x55   :  { %147 = vsyncpa [#allocation3], 1 }
  0x56   :  { %148 = vsyncpa [#allocation6], 1 }
  0x57   :  { %149 = vsyncpa [#allocation4], 1 }

</bundles_post_ra>
